<compile_context>
chip_gen: v7x
topology: tpu7x:2x2x1
jax: 0.10.0
libtpu: 0.0.40
codegen_flags: <defaults>
</compile_context>

<pallas_src>
import jax
import jax.numpy as jnp
from jax.experimental import pallas as pl
from jax.experimental.pallas import tpu as pltpu


def env_lstm_kernel(ids_ref, lens_ref, gate_tab_ref, whh_ref,
                    out_ref, h_out_ref, c_out_ref):
    # ids_ref      : (T*B, 1) int32   flattened token ids (time-major)
    # lens_ref     : (B, 1)   int32   true sequence lengths
    # gate_tab_ref : (V, 4H)  f32     = embed @ w_ih + b, g-columns pre-scaled x2
    # whh_ref      : (H, 4H)  f32     recurrent weights, g-columns pre-scaled x2
    # out_ref      : (T, B, H) f32
    # h_out_ref, c_out_ref : (B, H) f32
    T, B, H = out_ref.shape
    V, _ = gate_tab_ref.shape

    # ---- Fused embedding + input projection, one shot for all timesteps. ----
    # onehot[t*B+b, v] = (seq_ids[t, b] == v). Row selection is exact, so
    # onehot @ gate_tab == (embedding(seq_ids) @ w_ih + b) with g-cols scaled.
    ids = ids_ref[...]                                                # (T*B, 1)
    vocab = jax.lax.broadcasted_iota(jnp.int32, (T * B, V), 1)        # (T*B, V)
    onehot = (ids == vocab).astype(jnp.float32)                       # (T*B, V)

    # All input-gate contributions (+ bias, already folded) for every timestep.
    x_gates = jnp.dot(onehot, gate_tab_ref[...],
                      preferred_element_type=jnp.float32)             # (T*B, 4H)

    w_hh = whh_ref[...]                                               # (H, 4H)
    lens = lens_ref[...]                                              # (B, 1)

    h = jnp.zeros((B, H), jnp.float32)
    c = jnp.zeros((B, H), jnp.float32)

    # Static unrolled time loop (T is small and static); h/c carried as values.
    for t in range(T):
        gates = x_gates[t * B:(t + 1) * B, :] + jnp.dot(
            h, w_hh, preferred_element_type=jnp.float32)              # (B, 4H)
        # Single EUP pass: sigmoid over the full 128-lane (B, 4H) tile.
        # g-gate columns carry a x2 pre-scale, so tanh(z) == 2*sigmoid(2z) - 1.
        sig = jax.nn.sigmoid(gates)
        i_g = sig[:, 0 * H:1 * H]
        f_g = sig[:, 1 * H:2 * H]
        g_g = 2.0 * sig[:, 2 * H:3 * H] - 1.0
        o_g = sig[:, 3 * H:4 * H]
        c_new = f_g * c + i_g * g_g
        h_new = o_g * jnp.tanh(c_new)

        # Packed-sequence semantics: freeze state and zero outputs past length.
        valid = (jnp.int32(t) < lens)                                  # (B, 1)
        h = jnp.where(valid, h_new, h)
        c = jnp.where(valid, c_new, c)
        # NOTE: masked quarter-vreg store (H=32 < 128 lanes); negligible at this
        # size — revisit layout (lane-dense slab) if T*B*H grows (review item).
        out_ref[t] = jnp.where(valid, h_new, 0.0)

    h_out_ref[...] = h
    c_out_ref[...] = c


def prepare_environment_params(params):
    """One-time parameter transform (fold embed@w_ih + bias; x2 the g-gate cols)."""
    embed, w_ih, w_hh, b = params["embed"], params["w_ih"], params["w_hh"], params["b"]
    H = w_hh.shape[0]
    gate_tab = embed.astype(jnp.float32) @ w_ih.astype(jnp.float32) + b  # (V, 4H)
    scale = jnp.ones((4 * H,), jnp.float32).at[2 * H:3 * H].set(2.0)
    return {
        "gate_tab": gate_tab * scale,          # (V, 4H)
        "w_hh": w_hh.astype(jnp.float32) * scale,  # (H, 4H)
    }


def environment_forward(prepped, seq_ids, seq_len):
    """Equivalent of Environment.forward((seq_ids, seq_len)) with model='LSTM'."""
    T, B = seq_ids.shape
    H = prepped["w_hh"].shape[0]

    ids_flat = seq_ids.reshape(T * B, 1).astype(jnp.int32)
    lens = seq_len.reshape(B, 1).astype(jnp.int32)

    vmem = pl.BlockSpec(memory_space=pltpu.MemorySpace.VMEM)
    enc_out, h, c = pl.pallas_call(
        env_lstm_kernel,
        out_shape=(
            jax.ShapeDtypeStruct((T, B, H), jnp.float32),
            jax.ShapeDtypeStruct((B, H), jnp.float32),
            jax.ShapeDtypeStruct((B, H), jnp.float32),
        ),
        in_specs=[vmem, vmem, vmem, vmem],
        out_specs=(vmem, vmem, vmem),
    )(ids_flat, lens, prepped["gate_tab"], prepped["w_hh"])

    return enc_out, (h[None, :, :], c[None, :, :])   # h, c: [1, B, H]


def lstm_ref(seq_em, w_ih, w_hh, b, seq_len):
    """Pure-JAX reference (packed-sequence semantics) for correctness checking."""
    T, B, _E = seq_em.shape
    H = w_hh.shape[0]

    def cell(carry, inp):
        h_prev, c_prev = carry
        x_t, t = inp
        gates = x_t @ w_ih + h_prev @ w_hh + b
        i = jax.nn.sigmoid(gates[:, 0 * H:1 * H])
        f = jax.nn.sigmoid(gates[:, 1 * H:2 * H])
        g = jnp.tanh(gates[:, 2 * H:3 * H])
        o = jax.nn.sigmoid(gates[:, 3 * H:4 * H])
        c_new = f * c_prev + i * g
        h_new = o * jnp.tanh(c_new)
        valid = (t < seq_len)[:, None]
        h = jnp.where(valid, h_new, h_prev)
        c = jnp.where(valid, c_new, c_prev)
        out = jnp.where(valid, h_new, 0.0)
        return (h, c), out

    init = (jnp.zeros((B, H), jnp.float32), jnp.zeros((B, H), jnp.float32))
    (h, c), outs = jax.lax.scan(cell, init, (seq_em, jnp.arange(T)))
    return outs, h, c


if __name__ == "__main__":
    # Small shapes consistent with the module constructor:
    #   bsize=8, embed_dim=32, encod_dim=32, numlabel=16, T=8
    B, E, H, V, T = 8, 32, 32, 16, 8

    key = jax.random.PRNGKey(0)
    k_emb, k_wih, k_whh, k_b, k_seq = jax.random.split(key, 5)

    params = {
        "embed": 0.1 * jax.random.normal(k_emb, (V, E), jnp.float32),
        "w_ih": 0.1 * jax.random.normal(k_wih, (E, 4 * H), jnp.float32),
        "w_hh": 0.1 * jax.random.normal(k_whh, (H, 4 * H), jnp.float32),
        # Single fused bias == PyTorch's b_ih + b_hh.
        "b": 0.1 * jax.random.normal(k_b, (1, 4 * H), jnp.float32),
    }

    seq_ids = jax.random.randint(k_seq, (T, B), 0, V, dtype=jnp.int32)
    # Ragged lengths to exercise the packed-sequence masking path.
    seq_len = jnp.array([8, 5, 8, 3, 7, 8, 1, 6], dtype=jnp.int32)

    prepped = prepare_environment_params(params)   # one-time parameter transform

    enc_out, (h, c) = environment_forward(prepped, seq_ids, seq_len)
    enc_out = jax.block_until_ready(enc_out)
    h = jax.block_until_ready(h)
    c = jax.block_until_ready(c)

    # Correctness check against pure-JAX reference (original parameter layout).
    seq_em = jnp.take(params["embed"], seq_ids, axis=0)
    ref_out, ref_h, ref_c = lstm_ref(seq_em, params["w_ih"], params["w_hh"],
                                     params["b"], seq_len)
    assert enc_out.shape == (T, B, H)
    assert h.shape == (1, B, H) and c.shape == (1, B, H)
    assert jnp.allclose(enc_out, ref_out, atol=3e-5, rtol=3e-5)
    assert jnp.allclose(h[0], ref_h, atol=3e-5, rtol=3e-5)
    assert jnp.allclose(c[0], ref_c, atol=3e-5, rtol=3e-5)

    print("KERNEL_OK")
</pallas_src>

<mosaic_0001>
module attributes {stable_mosaic.version = 11 : i64} {
  func.func @env_lstm_kernel(%arg0: memref<64x1xi32, #tpu.memory_space<vmem>>, %arg1: memref<8x1xi32, #tpu.memory_space<vmem>>, %arg2: memref<16x128xf32, #tpu.memory_space<vmem>>, %arg3: memref<32x128xf32, #tpu.memory_space<vmem>>, %arg4: memref<8x8x32xf32, #tpu.memory_space<vmem>>, %arg5: memref<8x32xf32, #tpu.memory_space<vmem>>, %arg6: memref<8x32xf32, #tpu.memory_space<vmem>>) attributes {dimension_semantics = [], scalar_prefetch = 0 : i64, scratch_operands = 0 : i64, tpu.core_type = #tpu.core_type<tc>} {
    %c0 = arith.constant 0 : index
    %c0_0 = arith.constant 0 : index
    %0 = vector.load %arg0[%c0, %c0_0] : memref<64x1xi32, #tpu.memory_space<vmem>>, vector<64x1xi32>
    %1 = tpu.iota {dimensions = array<i32: 1>} : vector<64x16xi32>
    %2 = vector.broadcast %0 : vector<64x1xi32> to vector<64x16xi32>
    %3 = arith.cmpi eq, %2, %1 : vector<64x16xi32>
    %4 = arith.extui %3 : vector<64x16xi1> to vector<64x16xi32>
    %5 = arith.sitofp %4 : vector<64x16xi32> to vector<64x16xf32>
    %c0_1 = arith.constant 0 : index
    %c0_2 = arith.constant 0 : index
    %6 = vector.load %arg2[%c0_1, %c0_2] : memref<16x128xf32, #tpu.memory_space<vmem>>, vector<16x128xf32>
    %cst = arith.constant dense<0.000000e+00> : vector<64x128xf32>
    %7 = tpu.matmul %5, %6, %cst {dimension_numbers = #tpu.dot_dimension_numbers<[1], [0], [0], [1], [0, 0, 1, 1], [], []>} : vector<64x16xf32>, vector<16x128xf32>, vector<64x128xf32> -> vector<64x128xf32>
    %c0_3 = arith.constant 0 : index
    %c0_4 = arith.constant 0 : index
    %8 = vector.load %arg3[%c0_3, %c0_4] : memref<32x128xf32, #tpu.memory_space<vmem>>, vector<32x128xf32>
    %c0_5 = arith.constant 0 : index
    %c0_6 = arith.constant 0 : index
    %9 = vector.load %arg1[%c0_5, %c0_6] : memref<8x1xi32, #tpu.memory_space<vmem>>, vector<8x1xi32>
    %cst_7 = arith.constant 0.000000e+00 : f32
    %10 = vector.broadcast %cst_7 : f32 to vector<8x32xf32>
    %cst_8 = arith.constant 0.000000e+00 : f32
    %11 = vector.broadcast %cst_8 : f32 to vector<8x32xf32>
    %12 = vector.extract_strided_slice %7 {offsets = [0, 0], sizes = [8, 128], strides = [1, 1]} : vector<64x128xf32> to vector<8x128xf32>
    %cst_9 = arith.constant dense<0.000000e+00> : vector<8x128xf32>
    %13 = tpu.matmul %10, %8, %cst_9 {dimension_numbers = #tpu.dot_dimension_numbers<[1], [0], [0], [1], [0, 0, 1, 1], [], []>} : vector<8x32xf32>, vector<32x128xf32>, vector<8x128xf32> -> vector<8x128xf32>
    %14 = arith.addf %12, %13 : vector<8x128xf32>
    %15 = arith.negf %14 : vector<8x128xf32>
    %16 = math.exp %15 : vector<8x128xf32>
    %cst_10 = arith.constant 1.000000e+00 : f32
    %17 = vector.broadcast %cst_10 : f32 to vector<8x128xf32>
    %18 = arith.addf %17, %16 : vector<8x128xf32>
    %19 = arith.divf %17, %18 : vector<8x128xf32>
    %20 = vector.extract_strided_slice %19 {offsets = [0, 0], sizes = [8, 32], strides = [1, 1]} : vector<8x128xf32> to vector<8x32xf32>
    %21 = vector.extract_strided_slice %19 {offsets = [0, 32], sizes = [8, 32], strides = [1, 1]} : vector<8x128xf32> to vector<8x32xf32>
    %22 = vector.extract_strided_slice %19 {offsets = [0, 64], sizes = [8, 32], strides = [1, 1]} : vector<8x128xf32> to vector<8x32xf32>
    %cst_11 = arith.constant 2.000000e+00 : f32
    %23 = vector.broadcast %cst_11 : f32 to vector<8x32xf32>
    %24 = arith.mulf %23, %22 : vector<8x32xf32>
    %cst_12 = arith.constant 1.000000e+00 : f32
    %25 = vector.broadcast %cst_12 : f32 to vector<8x32xf32>
    %26 = arith.subf %24, %25 : vector<8x32xf32>
    %27 = vector.extract_strided_slice %19 {offsets = [0, 96], sizes = [8, 32], strides = [1, 1]} : vector<8x128xf32> to vector<8x32xf32>
    %28 = arith.mulf %21, %11 : vector<8x32xf32>
    %29 = arith.mulf %20, %26 : vector<8x32xf32>
    %30 = arith.addf %28, %29 : vector<8x32xf32>
    %31 = math.tanh %30 : vector<8x32xf32>
    %32 = arith.mulf %27, %31 : vector<8x32xf32>
    %c0_i32 = arith.constant 0 : i32
    %33 = vector.broadcast %c0_i32 : i32 to vector<8x1xi32>
    %34 = arith.cmpi slt, %33, %9 : vector<8x1xi32>
    %35 = vector.shape_cast %34 : vector<8x1xi1> to vector<8x1xi1>
    %36 = vector.broadcast %35 : vector<8x1xi1> to vector<8x32xi1>
    %37 = arith.select %36, %32, %10 : vector<8x32xi1>, vector<8x32xf32>
    %38 = vector.shape_cast %34 : vector<8x1xi1> to vector<8x1xi1>
    %39 = vector.broadcast %38 : vector<8x1xi1> to vector<8x32xi1>
    %40 = arith.select %39, %30, %11 : vector<8x32xi1>, vector<8x32xf32>
    %cst_13 = arith.constant 0.000000e+00 : f32
    %41 = vector.shape_cast %34 : vector<8x1xi1> to vector<8x1xi1>
    %42 = vector.broadcast %41 : vector<8x1xi1> to vector<8x32xi1>
    %43 = vector.broadcast %cst_13 : f32 to vector<8x32xf32>
    %44 = arith.select %42, %32, %43 : vector<8x32xi1>, vector<8x32xf32>
    %c0_14 = arith.constant 0 : index
    %c0_15 = arith.constant 0 : index
    %c0_16 = arith.constant 0 : index
    %45 = vector.load %arg4[%c0_14, %c0_15, %c0_16] : memref<8x8x32xf32, #tpu.memory_space<vmem>>, vector<1x8x32xf32>
    %46 = vector.shape_cast %45 : vector<1x8x32xf32> to vector<8x32xf32>
    %47 = vector.shape_cast %44 : vector<8x32xf32> to vector<1x8x32xf32>
    tpu.vector_store %arg4[%c0_14, %c0_15, %c0_16], %47 {strides = array<i32>} : memref<8x8x32xf32, #tpu.memory_space<vmem>>, vector<1x8x32xf32>,
    %48 = vector.extract_strided_slice %7 {offsets = [8, 0], sizes = [8, 128], strides = [1, 1]} : vector<64x128xf32> to vector<8x128xf32>
    %cst_17 = arith.constant dense<0.000000e+00> : vector<8x128xf32>
    %49 = tpu.matmul %37, %8, %cst_17 {dimension_numbers = #tpu.dot_dimension_numbers<[1], [0], [0], [1], [0, 0, 1, 1], [], []>} : vector<8x32xf32>, vector<32x128xf32>, vector<8x128xf32> -> vector<8x128xf32>
    %50 = arith.addf %48, %49 : vector<8x128xf32>
    %51 = arith.negf %50 : vector<8x128xf32>
    %52 = math.exp %51 : vector<8x128xf32>
    %cst_18 = arith.constant 1.000000e+00 : f32
    %53 = vector.broadcast %cst_18 : f32 to vector<8x128xf32>
    %54 = arith.addf %53, %52 : vector<8x128xf32>
    %55 = arith.divf %53, %54 : vector<8x128xf32>
    %56 = vector.extract_strided_slice %55 {offsets = [0, 0], sizes = [8, 32], strides = [1, 1]} : vector<8x128xf32> to vector<8x32xf32>
    %57 = vector.extract_strided_slice %55 {offsets = [0, 32], sizes = [8, 32], strides = [1, 1]} : vector<8x128xf32> to vector<8x32xf32>
    %58 = vector.extract_strided_slice %55 {offsets = [0, 64], sizes = [8, 32], strides = [1, 1]} : vector<8x128xf32> to vector<8x32xf32>
    %cst_19 = arith.constant 2.000000e+00 : f32
    %59 = vector.broadcast %cst_19 : f32 to vector<8x32xf32>
    %60 = arith.mulf %59, %58 : vector<8x32xf32>
    %cst_20 = arith.constant 1.000000e+00 : f32
    %61 = vector.broadcast %cst_20 : f32 to vector<8x32xf32>
    %62 = arith.subf %60, %61 : vector<8x32xf32>
    %63 = vector.extract_strided_slice %55 {offsets = [0, 96], sizes = [8, 32], strides = [1, 1]} : vector<8x128xf32> to vector<8x32xf32>
    %64 = arith.mulf %57, %40 : vector<8x32xf32>
    %65 = arith.mulf %56, %62 : vector<8x32xf32>
    %66 = arith.addf %64, %65 : vector<8x32xf32>
    %67 = math.tanh %66 : vector<8x32xf32>
    %68 = arith.mulf %63, %67 : vector<8x32xf32>
    %c1_i32 = arith.constant 1 : i32
    %69 = vector.broadcast %c1_i32 : i32 to vector<8x1xi32>
    %70 = arith.cmpi slt, %69, %9 : vector<8x1xi32>
    %71 = vector.shape_cast %70 : vector<8x1xi1> to vector<8x1xi1>
    %72 = vector.broadcast %71 : vector<8x1xi1> to vector<8x32xi1>
    %73 = arith.select %72, %68, %37 : vector<8x32xi1>, vector<8x32xf32>
    %74 = vector.shape_cast %70 : vector<8x1xi1> to vector<8x1xi1>
    %75 = vector.broadcast %74 : vector<8x1xi1> to vector<8x32xi1>
    %76 = arith.select %75, %66, %40 : vector<8x32xi1>, vector<8x32xf32>
    %cst_21 = arith.constant 0.000000e+00 : f32
    %77 = vector.shape_cast %70 : vector<8x1xi1> to vector<8x1xi1>
    %78 = vector.broadcast %77 : vector<8x1xi1> to vector<8x32xi1>
    %79 = vector.broadcast %cst_21 : f32 to vector<8x32xf32>
    %80 = arith.select %78, %68, %79 : vector<8x32xi1>, vector<8x32xf32>
    %c1 = arith.constant 1 : index
    %c0_22 = arith.constant 0 : index
    %c0_23 = arith.constant 0 : index
    %81 = vector.load %arg4[%c1, %c0_22, %c0_23] : memref<8x8x32xf32, #tpu.memory_space<vmem>>, vector<1x8x32xf32>
    %82 = vector.shape_cast %81 : vector<1x8x32xf32> to vector<8x32xf32>
    %83 = vector.shape_cast %80 : vector<8x32xf32> to vector<1x8x32xf32>
    tpu.vector_store %arg4[%c1, %c0_22, %c0_23], %83 {strides = array<i32>} : memref<8x8x32xf32, #tpu.memory_space<vmem>>, vector<1x8x32xf32>,
    %84 = vector.extract_strided_slice %7 {offsets = [16, 0], sizes = [8, 128], strides = [1, 1]} : vector<64x128xf32> to vector<8x128xf32>
    %cst_24 = arith.constant dense<0.000000e+00> : vector<8x128xf32>
    %85 = tpu.matmul %73, %8, %cst_24 {dimension_numbers = #tpu.dot_dimension_numbers<[1], [0], [0], [1], [0, 0, 1, 1], [], []>} : vector<8x32xf32>, vector<32x128xf32>, vector<8x128xf32> -> vector<8x128xf32>
    %86 = arith.addf %84, %85 : vector<8x128xf32>
    %87 = arith.negf %86 : vector<8x128xf32>
    %88 = math.exp %87 : vector<8x128xf32>
    %cst_25 = arith.constant 1.000000e+00 : f32
    %89 = vector.broadcast %cst_25 : f32 to vector<8x128xf32>
    %90 = arith.addf %89, %88 : vector<8x128xf32>
    %91 = arith.divf %89, %90 : vector<8x128xf32>
    %92 = vector.extract_strided_slice %91 {offsets = [0, 0], sizes = [8, 32], strides = [1, 1]} : vector<8x128xf32> to vector<8x32xf32>
    %93 = vector.extract_strided_slice %91 {offsets = [0, 32], sizes = [8, 32], strides = [1, 1]} : vector<8x128xf32> to vector<8x32xf32>
    %94 = vector.extract_strided_slice %91 {offsets = [0, 64], sizes = [8, 32], strides = [1, 1]} : vector<8x128xf32> to vector<8x32xf32>
    %cst_26 = arith.constant 2.000000e+00 : f32
    %95 = vector.broadcast %cst_26 : f32 to vector<8x32xf32>
    %96 = arith.mulf %95, %94 : vector<8x32xf32>
    %cst_27 = arith.constant 1.000000e+00 : f32
    %97 = vector.broadcast %cst_27 : f32 to vector<8x32xf32>
    %98 = arith.subf %96, %97 : vector<8x32xf32>
    %99 = vector.extract_strided_slice %91 {offsets = [0, 96], sizes = [8, 32], strides = [1, 1]} : vector<8x128xf32> to vector<8x32xf32>
    %100 = arith.mulf %93, %76 : vector<8x32xf32>
    %101 = arith.mulf %92, %98 : vector<8x32xf32>
    %102 = arith.addf %100, %101 : vector<8x32xf32>
    %103 = math.tanh %102 : vector<8x32xf32>
    %104 = arith.mulf %99, %103 : vector<8x32xf32>
    %c2_i32 = arith.constant 2 : i32
    %105 = vector.broadcast %c2_i32 : i32 to vector<8x1xi32>
    %106 = arith.cmpi slt, %105, %9 : vector<8x1xi32>
    %107 = vector.shape_cast %106 : vector<8x1xi1> to vector<8x1xi1>
    %108 = vector.broadcast %107 : vector<8x1xi1> to vector<8x32xi1>
    %109 = arith.select %108, %104, %73 : vector<8x32xi1>, vector<8x32xf32>
    %110 = vector.shape_cast %106 : vector<8x1xi1> to vector<8x1xi1>
    %111 = vector.broadcast %110 : vector<8x1xi1> to vector<8x32xi1>
    %112 = arith.select %111, %102, %76 : vector<8x32xi1>, vector<8x32xf32>
    %cst_28 = arith.constant 0.000000e+00 : f32
    %113 = vector.shape_cast %106 : vector<8x1xi1> to vector<8x1xi1>
    %114 = vector.broadcast %113 : vector<8x1xi1> to vector<8x32xi1>
    %115 = vector.broadcast %cst_28 : f32 to vector<8x32xf32>
    %116 = arith.select %114, %104, %115 : vector<8x32xi1>, vector<8x32xf32>
    %c2 = arith.constant 2 : index
    %c0_29 = arith.constant 0 : index
    %c0_30 = arith.constant 0 : index
    %117 = vector.load %arg4[%c2, %c0_29, %c0_30] : memref<8x8x32xf32, #tpu.memory_space<vmem>>, vector<1x8x32xf32>
    %118 = vector.shape_cast %117 : vector<1x8x32xf32> to vector<8x32xf32>
    %119 = vector.shape_cast %116 : vector<8x32xf32> to vector<1x8x32xf32>
    tpu.vector_store %arg4[%c2, %c0_29, %c0_30], %119 {strides = array<i32>} : memref<8x8x32xf32, #tpu.memory_space<vmem>>, vector<1x8x32xf32>,
    %120 = vector.extract_strided_slice %7 {offsets = [24, 0], sizes = [8, 128], strides = [1, 1]} : vector<64x128xf32> to vector<8x128xf32>
    %cst_31 = arith.constant dense<0.000000e+00> : vector<8x128xf32>
    %121 = tpu.matmul %109, %8, %cst_31 {dimension_numbers = #tpu.dot_dimension_numbers<[1], [0], [0], [1], [0, 0, 1, 1], [], []>} : vector<8x32xf32>, vector<32x128xf32>, vector<8x128xf32> -> vector<8x128xf32>
    %122 = arith.addf %120, %121 : vector<8x128xf32>
    %123 = arith.negf %122 : vector<8x128xf32>
    %124 = math.exp %123 : vector<8x128xf32>
    %cst_32 = arith.constant 1.000000e+00 : f32
    %125 = vector.broadcast %cst_32 : f32 to vector<8x128xf32>
    %126 = arith.addf %125, %124 : vector<8x128xf32>
    %127 = arith.divf %125, %126 : vector<8x128xf32>
    %128 = vector.extract_strided_slice %127 {offsets = [0, 0], sizes = [8, 32], strides = [1, 1]} : vector<8x128xf32> to vector<8x32xf32>
    %129 = vector.extract_strided_slice %127 {offsets = [0, 32], sizes = [8, 32], strides = [1, 1]} : vector<8x128xf32> to vector<8x32xf32>
    %130 = vector.extract_strided_slice %127 {offsets = [0, 64], sizes = [8, 32], strides = [1, 1]} : vector<8x128xf32> to vector<8x32xf32>
    %cst_33 = arith.constant 2.000000e+00 : f32
    %131 = vector.broadcast %cst_33 : f32 to vector<8x32xf32>
    %132 = arith.mulf %131, %130 : vector<8x32xf32>
    %cst_34 = arith.constant 1.000000e+00 : f32
    %133 = vector.broadcast %cst_34 : f32 to vector<8x32xf32>
    %134 = arith.subf %132, %133 : vector<8x32xf32>
    %135 = vector.extract_strided_slice %127 {offsets = [0, 96], sizes = [8, 32], strides = [1, 1]} : vector<8x128xf32> to vector<8x32xf32>
    %136 = arith.mulf %129, %112 : vector<8x32xf32>
    %137 = arith.mulf %128, %134 : vector<8x32xf32>
    %138 = arith.addf %136, %137 : vector<8x32xf32>
    %139 = math.tanh %138 : vector<8x32xf32>
    %140 = arith.mulf %135, %139 : vector<8x32xf32>
    %c3_i32 = arith.constant 3 : i32
    %141 = vector.broadcast %c3_i32 : i32 to vector<8x1xi32>
    %142 = arith.cmpi slt, %141, %9 : vector<8x1xi32>
    %143 = vector.shape_cast %142 : vector<8x1xi1> to vector<8x1xi1>
    %144 = vector.broadcast %143 : vector<8x1xi1> to vector<8x32xi1>
    %145 = arith.select %144, %140, %109 : vector<8x32xi1>, vector<8x32xf32>
    %146 = vector.shape_cast %142 : vector<8x1xi1> to vector<8x1xi1>
    %147 = vector.broadcast %146 : vector<8x1xi1> to vector<8x32xi1>
    %148 = arith.select %147, %138, %112 : vector<8x32xi1>, vector<8x32xf32>
    %cst_35 = arith.constant 0.000000e+00 : f32
    %149 = vector.shape_cast %142 : vector<8x1xi1> to vector<8x1xi1>
    %150 = vector.broadcast %149 : vector<8x1xi1> to vector<8x32xi1>
    %151 = vector.broadcast %cst_35 : f32 to vector<8x32xf32>
    %152 = arith.select %150, %140, %151 : vector<8x32xi1>, vector<8x32xf32>
    %c3 = arith.constant 3 : index
    %c0_36 = arith.constant 0 : index
    %c0_37 = arith.constant 0 : index
    %153 = vector.load %arg4[%c3, %c0_36, %c0_37] : memref<8x8x32xf32, #tpu.memory_space<vmem>>, vector<1x8x32xf32>
    %154 = vector.shape_cast %153 : vector<1x8x32xf32> to vector<8x32xf32>
    %155 = vector.shape_cast %152 : vector<8x32xf32> to vector<1x8x32xf32>
    tpu.vector_store %arg4[%c3, %c0_36, %c0_37], %155 {strides = array<i32>} : memref<8x8x32xf32, #tpu.memory_space<vmem>>, vector<1x8x32xf32>,
    %156 = vector.extract_strided_slice %7 {offsets = [32, 0], sizes = [8, 128], strides = [1, 1]} : vector<64x128xf32> to vector<8x128xf32>
    %cst_38 = arith.constant dense<0.000000e+00> : vector<8x128xf32>
    %157 = tpu.matmul %145, %8, %cst_38 {dimension_numbers = #tpu.dot_dimension_numbers<[1], [0], [0], [1], [0, 0, 1, 1], [], []>} : vector<8x32xf32>, vector<32x128xf32>, vector<8x128xf32> -> vector<8x128xf32>
    %158 = arith.addf %156, %157 : vector<8x128xf32>
    %159 = arith.negf %158 : vector<8x128xf32>
    %160 = math.exp %159 : vector<8x128xf32>
    %cst_39 = arith.constant 1.000000e+00 : f32
    %161 = vector.broadcast %cst_39 : f32 to vector<8x128xf32>
    %162 = arith.addf %161, %160 : vector<8x128xf32>
    %163 = arith.divf %161, %162 : vector<8x128xf32>
    %164 = vector.extract_strided_slice %163 {offsets = [0, 0], sizes = [8, 32], strides = [1, 1]} : vector<8x128xf32> to vector<8x32xf32>
    %165 = vector.extract_strided_slice %163 {offsets = [0, 32], sizes = [8, 32], strides = [1, 1]} : vector<8x128xf32> to vector<8x32xf32>
    %166 = vector.extract_strided_slice %163 {offsets = [0, 64], sizes = [8, 32], strides = [1, 1]} : vector<8x128xf32> to vector<8x32xf32>
    %cst_40 = arith.constant 2.000000e+00 : f32
    %167 = vector.broadcast %cst_40 : f32 to vector<8x32xf32>
    %168 = arith.mulf %167, %166 : vector<8x32xf32>
    %cst_41 = arith.constant 1.000000e+00 : f32
    %169 = vector.broadcast %cst_41 : f32 to vector<8x32xf32>
    %170 = arith.subf %168, %169 : vector<8x32xf32>
    %171 = vector.extract_strided_slice %163 {offsets = [0, 96], sizes = [8, 32], strides = [1, 1]} : vector<8x128xf32> to vector<8x32xf32>
    %172 = arith.mulf %165, %148 : vector<8x32xf32>
    %173 = arith.mulf %164, %170 : vector<8x32xf32>
    %174 = arith.addf %172, %173 : vector<8x32xf32>
    %175 = math.tanh %174 : vector<8x32xf32>
    %176 = arith.mulf %171, %175 : vector<8x32xf32>
    %c4_i32 = arith.constant 4 : i32
    %177 = vector.broadcast %c4_i32 : i32 to vector<8x1xi32>
    %178 = arith.cmpi slt, %177, %9 : vector<8x1xi32>
    %179 = vector.shape_cast %178 : vector<8x1xi1> to vector<8x1xi1>
    %180 = vector.broadcast %179 : vector<8x1xi1> to vector<8x32xi1>
    %181 = arith.select %180, %176, %145 : vector<8x32xi1>, vector<8x32xf32>
    %182 = vector.shape_cast %178 : vector<8x1xi1> to vector<8x1xi1>
    %183 = vector.broadcast %182 : vector<8x1xi1> to vector<8x32xi1>
    %184 = arith.select %183, %174, %148 : vector<8x32xi1>, vector<8x32xf32>
    %cst_42 = arith.constant 0.000000e+00 : f32
    %185 = vector.shape_cast %178 : vector<8x1xi1> to vector<8x1xi1>
    %186 = vector.broadcast %185 : vector<8x1xi1> to vector<8x32xi1>
    %187 = vector.broadcast %cst_42 : f32 to vector<8x32xf32>
    %188 = arith.select %186, %176, %187 : vector<8x32xi1>, vector<8x32xf32>
    %c4 = arith.constant 4 : index
    %c0_43 = arith.constant 0 : index
    %c0_44 = arith.constant 0 : index
    %189 = vector.load %arg4[%c4, %c0_43, %c0_44] : memref<8x8x32xf32, #tpu.memory_space<vmem>>, vector<1x8x32xf32>
    %190 = vector.shape_cast %189 : vector<1x8x32xf32> to vector<8x32xf32>
    %191 = vector.shape_cast %188 : vector<8x32xf32> to vector<1x8x32xf32>
    tpu.vector_store %arg4[%c4, %c0_43, %c0_44], %191 {strides = array<i32>} : memref<8x8x32xf32, #tpu.memory_space<vmem>>, vector<1x8x32xf32>,
    %192 = vector.extract_strided_slice %7 {offsets = [40, 0], sizes = [8, 128], strides = [1, 1]} : vector<64x128xf32> to vector<8x128xf32>
    %cst_45 = arith.constant dense<0.000000e+00> : vector<8x128xf32>
    %193 = tpu.matmul %181, %8, %cst_45 {dimension_numbers = #tpu.dot_dimension_numbers<[1], [0], [0], [1], [0, 0, 1, 1], [], []>} : vector<8x32xf32>, vector<32x128xf32>, vector<8x128xf32> -> vector<8x128xf32>
    %194 = arith.addf %192, %193 : vector<8x128xf32>
    %195 = arith.negf %194 : vector<8x128xf32>
    %196 = math.exp %195 : vector<8x128xf32>
    %cst_46 = arith.constant 1.000000e+00 : f32
    %197 = vector.broadcast %cst_46 : f32 to vector<8x128xf32>
    %198 = arith.addf %197, %196 : vector<8x128xf32>
    %199 = arith.divf %197, %198 : vector<8x128xf32>
    %200 = vector.extract_strided_slice %199 {offsets = [0, 0], sizes = [8, 32], strides = [1, 1]} : vector<8x128xf32> to vector<8x32xf32>
    %201 = vector.extract_strided_slice %199 {offsets = [0, 32], sizes = [8, 32], strides = [1, 1]} : vector<8x128xf32> to vector<8x32xf32>
    %202 = vector.extract_strided_slice %199 {offsets = [0, 64], sizes = [8, 32], strides = [1, 1]} : vector<8x128xf32> to vector<8x32xf32>
    %cst_47 = arith.constant 2.000000e+00 : f32
    %203 = vector.broadcast %cst_47 : f32 to vector<8x32xf32>
    %204 = arith.mulf %203, %202 : vector<8x32xf32>
    %cst_48 = arith.constant 1.000000e+00 : f32
    %205 = vector.broadcast %cst_48 : f32 to vector<8x32xf32>
    %206 = arith.subf %204, %205 : vector<8x32xf32>
    %207 = vector.extract_strided_slice %199 {offsets = [0, 96], sizes = [8, 32], strides = [1, 1]} : vector<8x128xf32> to vector<8x32xf32>
    %208 = arith.mulf %201, %184 : vector<8x32xf32>
    %209 = arith.mulf %200, %206 : vector<8x32xf32>
    %210 = arith.addf %208, %209 : vector<8x32xf32>
    %211 = math.tanh %210 : vector<8x32xf32>
    %212 = arith.mulf %207, %211 : vector<8x32xf32>
    %c5_i32 = arith.constant 5 : i32
    %213 = vector.broadcast %c5_i32 : i32 to vector<8x1xi32>
    %214 = arith.cmpi slt, %213, %9 : vector<8x1xi32>
    %215 = vector.shape_cast %214 : vector<8x1xi1> to vector<8x1xi1>
    %216 = vector.broadcast %215 : vector<8x1xi1> to vector<8x32xi1>
    %217 = arith.select %216, %212, %181 : vector<8x32xi1>, vector<8x32xf32>
    %218 = vector.shape_cast %214 : vector<8x1xi1> to vector<8x1xi1>
    %219 = vector.broadcast %218 : vector<8x1xi1> to vector<8x32xi1>
    %220 = arith.select %219, %210, %184 : vector<8x32xi1>, vector<8x32xf32>
    %cst_49 = arith.constant 0.000000e+00 : f32
    %221 = vector.shape_cast %214 : vector<8x1xi1> to vector<8x1xi1>
    %222 = vector.broadcast %221 : vector<8x1xi1> to vector<8x32xi1>
    %223 = vector.broadcast %cst_49 : f32 to vector<8x32xf32>
    %224 = arith.select %222, %212, %223 : vector<8x32xi1>, vector<8x32xf32>
    %c5 = arith.constant 5 : index
    %c0_50 = arith.constant 0 : index
    %c0_51 = arith.constant 0 : index
    %225 = vector.load %arg4[%c5, %c0_50, %c0_51] : memref<8x8x32xf32, #tpu.memory_space<vmem>>, vector<1x8x32xf32>
    %226 = vector.shape_cast %225 : vector<1x8x32xf32> to vector<8x32xf32>
    %227 = vector.shape_cast %224 : vector<8x32xf32> to vector<1x8x32xf32>
    tpu.vector_store %arg4[%c5, %c0_50, %c0_51], %227 {strides = array<i32>} : memref<8x8x32xf32, #tpu.memory_space<vmem>>, vector<1x8x32xf32>,
    %228 = vector.extract_strided_slice %7 {offsets = [48, 0], sizes = [8, 128], strides = [1, 1]} : vector<64x128xf32> to vector<8x128xf32>
    %cst_52 = arith.constant dense<0.000000e+00> : vector<8x128xf32>
    %229 = tpu.matmul %217, %8, %cst_52 {dimension_numbers = #tpu.dot_dimension_numbers<[1], [0], [0], [1], [0, 0, 1, 1], [], []>} : vector<8x32xf32>, vector<32x128xf32>, vector<8x128xf32> -> vector<8x128xf32>
    %230 = arith.addf %228, %229 : vector<8x128xf32>
    %231 = arith.negf %230 : vector<8x128xf32>
    %232 = math.exp %231 : vector<8x128xf32>
    %cst_53 = arith.constant 1.000000e+00 : f32
    %233 = vector.broadcast %cst_53 : f32 to vector<8x128xf32>
    %234 = arith.addf %233, %232 : vector<8x128xf32>
    %235 = arith.divf %233, %234 : vector<8x128xf32>
    %236 = vector.extract_strided_slice %235 {offsets = [0, 0], sizes = [8, 32], strides = [1, 1]} : vector<8x128xf32> to vector<8x32xf32>
    %237 = vector.extract_strided_slice %235 {offsets = [0, 32], sizes = [8, 32], strides = [1, 1]} : vector<8x128xf32> to vector<8x32xf32>
    %238 = vector.extract_strided_slice %235 {offsets = [0, 64], sizes = [8, 32], strides = [1, 1]} : vector<8x128xf32> to vector<8x32xf32>
    %cst_54 = arith.constant 2.000000e+00 : f32
    %239 = vector.broadcast %cst_54 : f32 to vector<8x32xf32>
    %240 = arith.mulf %239, %238 : vector<8x32xf32>
    %cst_55 = arith.constant 1.000000e+00 : f32
    %241 = vector.broadcast %cst_55 : f32 to vector<8x32xf32>
    %242 = arith.subf %240, %241 : vector<8x32xf32>
    %243 = vector.extract_strided_slice %235 {offsets = [0, 96], sizes = [8, 32], strides = [1, 1]} : vector<8x128xf32> to vector<8x32xf32>
    %244 = arith.mulf %237, %220 : vector<8x32xf32>
    %245 = arith.mulf %236, %242 : vector<8x32xf32>
    %246 = arith.addf %244, %245 : vector<8x32xf32>
    %247 = math.tanh %246 : vector<8x32xf32>
    %248 = arith.mulf %243, %247 : vector<8x32xf32>
    %c6_i32 = arith.constant 6 : i32
    %249 = vector.broadcast %c6_i32 : i32 to vector<8x1xi32>
    %250 = arith.cmpi slt, %249, %9 : vector<8x1xi32>
    %251 = vector.shape_cast %250 : vector<8x1xi1> to vector<8x1xi1>
    %252 = vector.broadcast %251 : vector<8x1xi1> to vector<8x32xi1>
    %253 = arith.select %252, %248, %217 : vector<8x32xi1>, vector<8x32xf32>
    %254 = vector.shape_cast %250 : vector<8x1xi1> to vector<8x1xi1>
    %255 = vector.broadcast %254 : vector<8x1xi1> to vector<8x32xi1>
    %256 = arith.select %255, %246, %220 : vector<8x32xi1>, vector<8x32xf32>
    %cst_56 = arith.constant 0.000000e+00 : f32
    %257 = vector.shape_cast %250 : vector<8x1xi1> to vector<8x1xi1>
    %258 = vector.broadcast %257 : vector<8x1xi1> to vector<8x32xi1>
    %259 = vector.broadcast %cst_56 : f32 to vector<8x32xf32>
    %260 = arith.select %258, %248, %259 : vector<8x32xi1>, vector<8x32xf32>
    %c6 = arith.constant 6 : index
    %c0_57 = arith.constant 0 : index
    %c0_58 = arith.constant 0 : index
    %261 = vector.load %arg4[%c6, %c0_57, %c0_58] : memref<8x8x32xf32, #tpu.memory_space<vmem>>, vector<1x8x32xf32>
    %262 = vector.shape_cast %261 : vector<1x8x32xf32> to vector<8x32xf32>
    %263 = vector.shape_cast %260 : vector<8x32xf32> to vector<1x8x32xf32>
    tpu.vector_store %arg4[%c6, %c0_57, %c0_58], %263 {strides = array<i32>} : memref<8x8x32xf32, #tpu.memory_space<vmem>>, vector<1x8x32xf32>,
    %264 = vector.extract_strided_slice %7 {offsets = [56, 0], sizes = [8, 128], strides = [1, 1]} : vector<64x128xf32> to vector<8x128xf32>
    %cst_59 = arith.constant dense<0.000000e+00> : vector<8x128xf32>
    %265 = tpu.matmul %253, %8, %cst_59 {dimension_numbers = #tpu.dot_dimension_numbers<[1], [0], [0], [1], [0, 0, 1, 1], [], []>} : vector<8x32xf32>, vector<32x128xf32>, vector<8x128xf32> -> vector<8x128xf32>
    %266 = arith.addf %264, %265 : vector<8x128xf32>
    %267 = arith.negf %266 : vector<8x128xf32>
    %268 = math.exp %267 : vector<8x128xf32>
    %cst_60 = arith.constant 1.000000e+00 : f32
    %269 = vector.broadcast %cst_60 : f32 to vector<8x128xf32>
    %270 = arith.addf %269, %268 : vector<8x128xf32>
    %271 = arith.divf %269, %270 : vector<8x128xf32>
    %272 = vector.extract_strided_slice %271 {offsets = [0, 0], sizes = [8, 32], strides = [1, 1]} : vector<8x128xf32> to vector<8x32xf32>
    %273 = vector.extract_strided_slice %271 {offsets = [0, 32], sizes = [8, 32], strides = [1, 1]} : vector<8x128xf32> to vector<8x32xf32>
    %274 = vector.extract_strided_slice %271 {offsets = [0, 64], sizes = [8, 32], strides = [1, 1]} : vector<8x128xf32> to vector<8x32xf32>
    %cst_61 = arith.constant 2.000000e+00 : f32
    %275 = vector.broadcast %cst_61 : f32 to vector<8x32xf32>
    %276 = arith.mulf %275, %274 : vector<8x32xf32>
    %cst_62 = arith.constant 1.000000e+00 : f32
    %277 = vector.broadcast %cst_62 : f32 to vector<8x32xf32>
    %278 = arith.subf %276, %277 : vector<8x32xf32>
    %279 = vector.extract_strided_slice %271 {offsets = [0, 96], sizes = [8, 32], strides = [1, 1]} : vector<8x128xf32> to vector<8x32xf32>
    %280 = arith.mulf %273, %256 : vector<8x32xf32>
    %281 = arith.mulf %272, %278 : vector<8x32xf32>
    %282 = arith.addf %280, %281 : vector<8x32xf32>
    %283 = math.tanh %282 : vector<8x32xf32>
    %284 = arith.mulf %279, %283 : vector<8x32xf32>
    %c7_i32 = arith.constant 7 : i32
    %285 = vector.broadcast %c7_i32 : i32 to vector<8x1xi32>
    %286 = arith.cmpi slt, %285, %9 : vector<8x1xi32>
    %287 = vector.shape_cast %286 : vector<8x1xi1> to vector<8x1xi1>
    %288 = vector.broadcast %287 : vector<8x1xi1> to vector<8x32xi1>
    %289 = arith.select %288, %284, %253 : vector<8x32xi1>, vector<8x32xf32>
    %290 = vector.shape_cast %286 : vector<8x1xi1> to vector<8x1xi1>
    %291 = vector.broadcast %290 : vector<8x1xi1> to vector<8x32xi1>
    %292 = arith.select %291, %282, %256 : vector<8x32xi1>, vector<8x32xf32>
    %cst_63 = arith.constant 0.000000e+00 : f32
    %293 = vector.shape_cast %286 : vector<8x1xi1> to vector<8x1xi1>
    %294 = vector.broadcast %293 : vector<8x1xi1> to vector<8x32xi1>
    %295 = vector.broadcast %cst_63 : f32 to vector<8x32xf32>
    %296 = arith.select %294, %284, %295 : vector<8x32xi1>, vector<8x32xf32>
    %c7 = arith.constant 7 : index
    %c0_64 = arith.constant 0 : index
    %c0_65 = arith.constant 0 : index
    %297 = vector.load %arg4[%c7, %c0_64, %c0_65] : memref<8x8x32xf32, #tpu.memory_space<vmem>>, vector<1x8x32xf32>
    %298 = vector.shape_cast %297 : vector<1x8x32xf32> to vector<8x32xf32>
    %299 = vector.shape_cast %296 : vector<8x32xf32> to vector<1x8x32xf32>
    tpu.vector_store %arg4[%c7, %c0_64, %c0_65], %299 {strides = array<i32>} : memref<8x8x32xf32, #tpu.memory_space<vmem>>, vector<1x8x32xf32>,
    %c0_66 = arith.constant 0 : index
    %c0_67 = arith.constant 0 : index
    %300 = vector.load %arg5[%c0_66, %c0_67] : memref<8x32xf32, #tpu.memory_space<vmem>>, vector<8x32xf32>
    tpu.vector_store %arg5[%c0_66, %c0_67], %289 {strides = array<i32>} : memref<8x32xf32, #tpu.memory_space<vmem>>, vector<8x32xf32>,
    %c0_68 = arith.constant 0 : index
    %c0_69 = arith.constant 0 : index
    %301 = vector.load %arg6[%c0_68, %c0_69] : memref<8x32xf32, #tpu.memory_space<vmem>>, vector<8x32xf32>
    tpu.vector_store %arg6[%c0_68, %c0_69], %292 {strides = array<i32>} : memref<8x32xf32, #tpu.memory_space<vmem>>, vector<8x32xf32>,
    return
  }
}

</mosaic_0001>

<bundles_post_ra>
// kernel: tpu_custom_call.1
= control target key start
LH: loop header
LB: loop body
LE: loop exit
PB: predicated region body
PF: predicated region fallthrough
CT: control target
= control target key end

     0   :  { %12 = vsyncpa [#allocation3], 0  ;;  %v1569_v2 = vmov 0   ;;  %v1570_v3 = vmov 0.0|0.0   ;;  %s1960_s0 = inlined_call_operand.vmem [shape: s32[64,1], index: 0, kind: input, shape index: {}]   ;;  %s1961_s1 = inlined_call_operand.vmem [shape: s32[8,1], index: 1, kind: input, shape index: {}]   ;;  %s1962_s2 = inlined_call_operand.vmem [shape: f32[16,128], index: 2, kind: input, shape index: {}]   ;;  %s1963_s3 = inlined_call_operand.vmem [shape: f32[32,128], index: 3, kind: input, shape index: {}]   ;;  %s1964_s4 = inlined_call_operand.hbm [shape: f32[8,8,32], index: 4, kind: output, shape index: {0}]   ;;  %s1965_s5 = inlined_call_operand.hbm [shape: f32[8,32], index: 5, kind: output, shape index: {1}]   ;;  %s1966_s6 = inlined_call_operand.hbm [shape: f32[8,32], index: 6, kind: output, shape index: {2}]  }
   0x1   :  { %v22_v0 = vld [vmem:[%s1960_s0] sm:$0xff]  ;;  %1449 = vset.pattern.permute.xlu0 %v1569_v2  ;;  %1389 = vmatprep.subr.bf16.mxu1 %v1570_v3  ;;  %v213_v5 = vld [vmem:[%s1963_s3 + $0x8] sm:$0xff]  ;;  %v214_v9 = vld [vmem:[%s1963_s3 + $0x10] sm:$0xff] }
   0x2   :  { %v1622_v1 = vld [vmem:[%s1961_s1] sm:$0xff]  ;;  %33 = vperm.xlu0 %1449, %v22_v0   ;;  %v81_v8 = vld [vmem:[%s1962_s2 + $0x8] sm:$0xff]  ;;  %v215_v10 = vld [vmem:[%s1963_s3 + $0x18] sm:$0xff]  ;;  %1450 = vset.pattern.permute.xlu1 %v1569_v2 }
   0x3   :  { %v212_v4 = vld [vmem:[%s1963_s3] sm:$0xff]  ;;  %v23_v11 = vld [vmem:[%s1960_s0 + $0x8] sm:$0xff] }
   0x4   :  { %v80_v6 = vld [vmem:[%s1962_s2] sm:$0xff]  ;;  %v1635_v7 = vpack.c.bf16 %v213_v5, %v212_v4 }
   0x5   :  { %v1385_v12 = vpack.c.bf16 %v81_v8, %v80_v6 }
   0x6   :  { %13 = vsyncpa [#allocation5], 0  ;;  %vm317_vm0 = vcmp.gt.s32.totalorder %v1622_v1, 0  ;;  %1391 = vmatpush3.bf16.msra.mxu1 %v1635_v7  ;;  %v1652_v13 = vpack.c.bf16 %v215_v10, %v214_v9  ;;  %36 = vperm.xlu0 %1449, %v23_v11   ;;  %vm1571_vm1 = vmmov 0   ;;  %v1572_v15 = vmov 0.0   ;;  %s1573_s2 = smov 64  }
   0x7   :  { %1386 = vmatprep.subr.bf16.mxu0 %v1385_v12  ;;  %1392 = vmatprep.subr.bf16.mxu1 %v1570_v3  ;;  %v318_v14 = vsel %vm317_vm0, 1, %v1569_v2  ;;  %v30_v16 = vlaneseq  ;;  %vm82_vm2 = vcmask 130048   ;;  %s1574_s3 = smov 32   ;;  %vm217_vm6 = vcmask 261120   ;;  %v24_v54 = vld [vmem:[%s1960_s0 + $0x10] sm:$0xff]  ;;  %v26_v55 = vld [vmem:[%s1960_s0 + $0x20] sm:$0xff] }
   0x8   :  { %1388 = vmatpush3.bf16.msra.mxu0 %v1385_v12  ;;  %1305 = vmatprep.mubr.msk.f32.mxu1 %vm1571_vm1, %v1572_v15  ;;  %vm428_vm7 = vcmp.gt.s32.totalorder %v1622_v1, 1  ;;  %v28_v56 = vld [vmem:[%s1960_s0 + $0x30] sm:$0xff]  ;;  %v25_v6 = vld [vmem:[%s1960_s0 + $0x18] sm:$0xff]  ;;  %v27_v8 = vld [vmem:[%s1960_s0 + $0x28] sm:$0xff]  ;;  %vm544_vm15 = vcmp.gt.s32.totalorder %v1622_v1, 2  ;;  %s1576_s26 = smov [#allocation4]  }
   0x9   :  { %1401 = vmatprep.subr.bf16.mxu0 %v1570_v3  ;;  %v1668_v17 = vand.u32 127, %v30_v16  ;;  %v429_v53 = vsel %vm428_vm7, 1, %v1569_v2  ;;  %v29_v9 = vld [vmem:[%s1960_s0 + $0x38] sm:$0xff]  ;;  %vm892_vm7 = vcmp.gt.s32.totalorder %v1622_v1, 5  ;;  %s1575_s0 = smov 96   ;;  %s1167_s27 = sshll.u32 %s1576_s26, 4  ;;  %s1168_s27 = int_to_ptr.vmem [resolvable:$true] %s1167_s27 }
   0xa   :  { %1394 = vmatpush3.bf16.msra.mxu1 %v1652_v13  ;;  %320 = vperm.xlu0 %1449, %v318_v14   ;;  %s1577_s28 = smov [#allocation2]   ;;  %s1578_s30 = smov [#allocation6]  }
   0xb   :  { %1395 = vmatprep.subr.bf16.mxu1 %v1570_v3  ;;  %s1154_s29 = sshll.u32 %s1577_s28, 4  ;;  %s1177_s1 = sshll.u32 %s1578_s30, 4  ;;  %s1907_s29 = int_to_ptr.vmem [resolvable:$true] %s1154_s29  ;;  %s1911_s1 = int_to_ptr.vmem [resolvable:$true] %s1177_s1 }
   0xc   :  { %s1499_s7 = scalar_lea.vmem %s1168_s27, 128  ;;  %p1504_p1 = scmp.lt.s32.totalorder %s1168_s27, %s1168_s27 }
   0xd   :  { %1306 = vmatmul.mubr.f32.vlgmr.msra.gmra.mrb[0].mxu1 %v1572_v15  ;;  %p1500_p0 = scmp.ne.s32.totalorder %s1168_s27, %s1499_s7  ;;  %p1505_p2 = scmp.lt.s32.totalorder %s1499_s7, %s1499_s7 }
   0xe   :  { %1397 = vmatpush3.bf16.msra.mxu1 %v1635_v7  ;;  %1316 = vmatprep.mubr.msk.f32.mxu1 %vm1571_vm1, %v1572_v15 }
   0xf   :  { %1398 = vmatprep.subr.bf16.mxu1 %v1570_v3  ;;  %p1506_p3 = por %p1505_p2, %p1504_p1 }
  0x11   :  { %p1507_p4 = pnand %p1506_p3, %p1500_p0 }
  0x12   :  { %1400 = vmatpush3.bf16.msra.mxu1 %v1652_v13 }
  0x13   :  { %1407 = vmatprep.subr.bf16.mxu1 %v1570_v3 }
  0x81   :  { %v34_v18 = vpop.permute.xlu0 %33 }
  0x82   :  { %vm56_vm3 = vcmp.eq.s32.totalorder %v34_v18, %v1668_v17 }
  0x83   :  { %v1192_v19 = vsel %vm56_vm3, 1.0, %v1572_v15 }
  0x84   :  { %1285 = vmatprep.mubr.msk.f32.mxu0 %vm82_vm2, %v1192_v19 }
  0x85   :  { %v37_v20 = vpop.permute.xlu0 %36 }
  0x86   :  { %vm57_vm4 = vcmp.eq.s32.totalorder %v37_v20, %v1668_v17 }
  0x87   :  { %v1193_v21 = vsel %vm57_vm4, 1.0, %v1572_v15  ;;  %vm776_vm4 = vcmp.gt.s32.totalorder %v1622_v1, 4 }
  0x88   :  { %1286 = vmatmul.mubr.msk.f32.vlgmr.msra.gmra.mrb[0].mxu0 %vm82_vm2, %v1193_v21 }
  0x89   :  { %1403 = vmatpush3.bf16.msra.mxu0 %v1635_v7  ;;  %v321_v39 = vpop.permute.xlu0 %320 }
  0x8a   :  { %1404 = vmatprep.subr.bf16.mxu0 %v1570_v3  ;;  %vm322_vm5 = vcmp.eq.s32.totalorder %v321_v39, 1 }
  0x8d   :  { %1406 = vmatpush3.bf16.msra.mxu0 %v1652_v13 }
  0x8e   :  { %1413 = vmatprep.subr.bf16.mxu0 %v1570_v3 }
  0xe0   :  { %v287_v22 = vpop.f32.mrb[0].mxu1 }
  0xe1   :  { %v1307_v23 = vpop.f32.mrb[1].mxu1 }
 0x15b   :  { %v1287_v24 = vpop.f32.mrb[0].mxu0 }
 0x15c   :  { %v173_v25 = vpop.f32.mrb[1].mxu0 }
 0x15d   :  { %v291_v26 = vadd.f32 %v287_v22, %v173_v25 }
 0x15f   :  { %v1208_v27 = vmul.f32 -1.442695, %v291_v26 }
 0x161   :  { %1451 = vpow2.f32 %v1208_v27 }
 0x16b   :  { %v1452_v28 = vpop.eup %1451 }
 0x16c   :  { %v295_v29 = vadd.f32 1.0, %v1452_v28 }
 0x16e   :  { %1453 = vrcp.f32 %v295_v29 }
 0x178   :  { %v1454_v30 = vpop.eup %1453 }
 0x179   :  { %v298_v31 = vmul.f32 2.0, %v1454_v30  ;;  %v300_v35 = vmul.f32 0.0, %v1454_v30 }
 0x17b   :  { %v1209_v32 = vadd.f32 -1.0, %v298_v31 }
 0x17d   :  { %302 = vrot.lane.b32.xlu1 %v1209_v32, %s1573_s2 }
 0x1ef   :  { %v303_v33 = vpop.permute.xlu1 %302 }
 0x1f0   :  { %v305_v34 = vmul.f32 %v1454_v30, %v303_v33 }
 0x1f2   :  { %307 = vrot.lane.b32.xlu1 %v305_v34, %s1574_s3 }
 0x264   :  { %v308_v36 = vpop.permute.xlu1 %307 }
 0x265   :  { %v310_v37 = vadd.f32 %v308_v36, %v300_v35 }
 0x267   :  { %1455 = vtanh.f32 %v310_v37  ;;  %v1712_v62 = vsel %vm322_vm5, %v310_v37, 0.0 }
 0x271   :  { %v1456_v38 = vpop.eup %1455 }
 0x272   :  { %313 = vrot.lane.b32.xlu1 %v1456_v38, %s1573_s2 }
 0x2e4   :  { %v314_v40 = vpop.permute.xlu1 %313 }
 0x2e5   :  { %v316_v41 = vmul.f32 %v1454_v30, %v314_v40 }
 0x2e7   :  { %v323_v42 = vsel %vm322_vm5, %v316_v41, 0.0  ;;  %v545_v41 = vsel %vm544_vm15, 1, %v1569_v2 }
 0x2e8   :  { %326 = vrot.lane.b32.xlu0 %v323_v42, %s1574_s3 }
 0x35a   :  { %v327_v43 = vpop.permute.xlu0 %326 }
 0x35b   :  { %329 = vst.msk [vmem:[#allocation2] sm:$0xff] %vm217_vm6, %v327_v43  ;;  %1317 = vmatmul.mubr.msk.f32.vlgmr.msra.gmra.mrb[2].mxu1 %vm217_vm6, %v327_v43 }
 0x35c   :  { %1409 = vmatpush3.bf16.msra.mxu1 %v1635_v7  ;;  %1338 = vmatprep.mubr.msk.f32.mxu1 %vm1571_vm1, %v1572_v15 }
 0x35d   :  { %1410 = vmatprep.subr.bf16.mxu1 %v1570_v3 }
 0x360   :  { %1412 = vmatpush3.bf16.msra.mxu1 %v1652_v13 }
 0x361   :  { %1419 = vmatprep.subr.bf16.mxu1 %v1570_v3 }
 0x42e   :  { %v398_v44 = vpop.f32.mrb[2].mxu1 }
 0x42f   :  { %v402_v45 = vadd.f32 %v1287_v24, %v398_v44  ;;  %v1318_v46 = vpop.f32.mrb[3].mxu1 }
 0x431   :  { %v1211_v47 = vmul.f32 -1.442695, %v402_v45 }
 0x433   :  { %1457 = vpow2.f32 %v1211_v47 }
 0x43d   :  { %v1458_v48 = vpop.eup %1457 }
 0x43e   :  { %v406_v49 = vadd.f32 1.0, %v1458_v48 }
 0x440   :  { %1459 = vrcp.f32 %v406_v49 }
 0x44a   :  { %v1460_v50 = vpop.eup %1459 }
 0x44b   :  { %v409_v51 = vmul.f32 2.0, %v1460_v50  ;;  %v411_v63 = vmul.f32 %v1460_v50, %v1712_v62 }
 0x44d   :  { %v1212_v52 = vadd.f32 -1.0, %v409_v51 }
 0x44f   :  { %413 = vrot.lane.b32.xlu1 %v1212_v52, %s1573_s2 }
 0x453   :  { %431 = vperm.xlu1 %1450, %v429_v53  }
 0x457   :  { %39 = vperm.xlu1 %1450, %v24_v54  }
 0x45b   :  { %45 = vperm.xlu1 %1450, %v26_v55  }
 0x45f   :  { %51 = vperm.xlu1 %1450, %v28_v56  }
 0x4c1   :  { %v414_v57 = vpop.permute.xlu1 %413 }
 0x4c2   :  { %v416_v58 = vmul.f32 %v1460_v50, %v414_v57 }
 0x4c4   :  { %418 = vrot.lane.b32.xlu0 %v416_v58, %s1574_s3 }
 0x4d2   :  { %v1706_v59 = vpop.permute.xlu1 %431 }
 0x4d3   :  { %vm433_vm9 = vcmp.eq.s32.totalorder %v1706_v59, 1 }
 0x4d6   :  { %v40_v60 = vpop.permute.xlu1 %39 }
 0x4d7   :  { %vm58_vm8 = vcmp.eq.s32.totalorder %v40_v60, %v1668_v17 }
 0x4d8   :  { %v1194_v61 = vsel %vm58_vm8, 1.0, %v1572_v15  ;;  %vm1008_vm8 = vcmp.gt.s32.totalorder %v1622_v1, 6 }
 0x4d9   :  { %1288 = vmatprep.mubr.msk.f32.mxu0 %vm82_vm2, %v1194_v61 }
 0x4da   :  { %v46_v14 = vpop.permute.xlu1 %45 }
 0x4db   :  { %vm60_vm10 = vcmp.eq.s32.totalorder %v46_v14, %v1668_v17 }
 0x4dc   :  { %v1196_v20 = vsel %vm60_vm10, 1.0, %v1572_v15 }
 0x4de   :  { %v52_v18 = vpop.permute.xlu1 %51 }
 0x4df   :  { %vm62_vm12 = vcmp.eq.s32.totalorder %v52_v18, %v1668_v17 }
 0x4e0   :  { %v1198_v23 = vsel %vm62_vm12, 1.0, %v1572_v15 }
 0x536   :  { %v419_v0 = vpop.permute.xlu0 %418 }
 0x537   :  { %v1715_v4 = vadd.f32 %v419_v0, %v411_v63 }
 0x539   :  { %1461 = vtanh.f32 %v1715_v4  ;;  %v435_v44 = vsel %vm433_vm9, %v1715_v4, %v1712_v62 }
 0x543   :  { %v1462_v5 = vpop.eup %1461 }
 0x544   :  { %424 = vrot.lane.b32.xlu0 %v1462_v5, %s1573_s2 }
 0x548   :  { %42 = vperm.xlu0 %1449, %v25_v6  }
 0x54c   :  { %48 = vperm.xlu0 %1449, %v27_v8  }
 0x550   :  { %54 = vperm.xlu0 %1449, %v29_v9  }
 0x5b6   :  { %v425_v10 = vpop.permute.xlu0 %424 }
 0x5b7   :  { %v1728_v11 = vmul.f32 %v1460_v50, %v425_v10 }
 0x5b9   :  { %v1734_v12 = vsel %vm433_vm9, %v1728_v11, %v323_v42 }
 0x5ba   :  { %444 = vrot.lane.b32.xlu1 %v1734_v12, %s1574_s3 }
 0x5c7   :  { %v43_v16 = vpop.permute.xlu0 %42 }
 0x5c8   :  { %vm59_vm11 = vcmp.eq.s32.totalorder %v43_v16, %v1668_v17 }
 0x5c9   :  { %v1195_v19 = vsel %vm59_vm11, 1.0, %v1572_v15  ;;  %vm1124_vm11 = vcmp.gt.s32.totalorder %v1622_v1, 7 }
 0x5ca   :  { %1289 = vmatmul.mubr.msk.f32.gmra.mrb[2].mxu0 %vm82_vm2, %v1195_v19 }
 0x5cb   :  { %v49_v21 = vpop.permute.xlu0 %48  ;;  %1291 = vmatprep.mubr.msk.f32.mxu0 %vm82_vm2, %v1196_v20 }
 0x5cc   :  { %vm61_vm13 = vcmp.eq.s32.totalorder %v49_v21, %v1668_v17 }
 0x5cd   :  { %v1197_v22 = vsel %vm61_vm13, 1.0, %v1572_v15 }
 0x5ce   :  { %1292 = vmatmul.mubr.msk.f32.gmra.mrb[4].mxu0 %vm82_vm2, %v1197_v22 }
 0x5cf   :  { %v55_v24 = vpop.permute.xlu0 %54  ;;  %1294 = vmatprep.mubr.msk.f32.mxu0 %vm82_vm2, %v1198_v23 }
 0x5d0   :  { %vm63_vm14 = vcmp.eq.s32.totalorder %v55_v24, %v1668_v17 }
 0x5d1   :  { %v1199_v25 = vsel %vm63_vm14, 1.0, %v1572_v15 }
 0x5d2   :  { %1295 = vmatmul.mubr.msk.f32.gmra.mrb[6].mxu0 %vm82_vm2, %v1199_v25  ;;  %vm660_vm2 = vcmp.gt.s32.totalorder %v1622_v1, 3 }
 0x5d3   :  { %1327 = vmatprep.mubr.msk.f32.mxu0 %vm1571_vm1, %v1572_v15  ;;  %v661_v0 = vsel %vm660_vm2, 1, %v1569_v2 }
 0x62c   :  { %v445_v26 = vpop.permute.xlu1 %444 }
 0x62d   :  { %1328 = vmatmul.mubr.msk.f32.vlgmr.msra.gmra.mrb[8].mxu0 %vm217_vm6, %v445_v26 }
 0x62e   :  { %1415 = vmatpush3.bf16.msra.mxu0 %v1635_v7  ;;  %1349 = vmatprep.mubr.msk.f32.mxu0 %vm1571_vm1, %v1572_v15 }
 0x62f   :  { %1416 = vmatprep.subr.bf16.mxu0 %v1570_v3 }
 0x632   :  { %1418 = vmatpush3.bf16.msra.mxu0 %v1652_v13 }
 0x633   :  { %1425 = vmatprep.subr.bf16.mxu0 %v1570_v3 }
 0x69d   :  { %v1290_v17 = vpop.f32.mrb[2].mxu0 }
 0x69e   :  { %v183_v27 = vpop.f32.mrb[3].mxu0 }
 0x6a1   :  { %v1762_v28 = vpop.f32.mrb[4].mxu0 }
 0x6a2   :  { %v1764_v29 = vpop.f32.mrb[5].mxu0 }
 0x6a5   :  { %v1766_v30 = vpop.f32.mrb[6].mxu0 }
 0x6a6   :  { %v1768_v31 = vpop.f32.mrb[7].mxu0 }
 0x700   :  { %v514_v32 = vpop.f32.mrb[8].mxu0 }
 0x701   :  { %v518_v33 = vadd.f32 %v514_v32, %v183_v27  ;;  %v1329_v34 = vpop.f32.mrb[9].mxu0 }
 0x703   :  { %v1214_v35 = vmul.f32 -1.442695, %v518_v33  ;;  %v777_v33 = vsel %vm776_vm4, 1, %v1569_v2 }
 0x705   :  { %1463 = vpow2.f32 %v1214_v35 }
 0x70f   :  { %v1464_v36 = vpop.eup %1463 }
 0x710   :  { %v522_v37 = vadd.f32 1.0, %v1464_v36 }
 0x712   :  { %1465 = vrcp.f32 %v522_v37 }
 0x71c   :  { %v1466_v38 = vpop.eup %1465 }
 0x71d   :  { %v525_v39 = vmul.f32 2.0, %v1466_v38  ;;  %v527_v45 = vmul.f32 %v1466_v38, %v435_v44 }
 0x71f   :  { %v1215_v40 = vadd.f32 -1.0, %v525_v39 }
 0x721   :  { %529 = vrot.lane.b32.xlu0 %v1215_v40, %s1573_s2 }
 0x725   :  { %547 = vperm.xlu0 %1449, %v545_v41  }
 0x793   :  { %v530_v42 = vpop.permute.xlu0 %529 }
 0x794   :  { %v532_v43 = vmul.f32 %v1466_v38, %v530_v42 }
 0x796   :  { %534 = vrot.lane.b32.xlu1 %v532_v43, %s1574_s3 }
 0x7a4   :  { %v1779_v49 = vpop.permute.xlu0 %547 }
 0x7a5   :  { %vm549_vm0 = vcmp.eq.s32.totalorder %v1779_v49, 1 }
 0x808   :  { %v535_v46 = vpop.permute.xlu1 %534 }
 0x809   :  { %v537_v47 = vadd.f32 %v535_v46, %v527_v45 }
 0x80b   :  { %1467 = vtanh.f32 %v537_v47  ;;  %v551_v6 = vsel %vm549_vm0, %v537_v47, %v435_v44 }
 0x815   :  { %v1468_v48 = vpop.eup %1467 }
 0x816   :  { %540 = vrot.lane.b32.xlu1 %v1468_v48, %s1573_s2 }
 0x888   :  { %v541_v50 = vpop.permute.xlu1 %540 }
 0x889   :  { %v1781_v51 = vmul.f32 %v1466_v38, %v541_v50 }
 0x88b   :  { %v550_v52 = vsel %vm549_vm0, %v1781_v51, %v1734_v12 }
 0x88c   :  { %560 = vrot.lane.b32.xlu0 %v550_v52, %s1574_s3 }
 0x8fe   :  { %v561_v53 = vpop.permute.xlu0 %560 }
 0x8ff   :  { %1339 = vmatmul.mubr.msk.f32.vlgmr.msra.gmra.mrb[4].mxu1 %vm217_vm6, %v561_v53 }
 0x900   :  { %1421 = vmatpush3.bf16.msra.mxu1 %v1635_v7  ;;  %1360 = vmatprep.mubr.msk.f32.mxu1 %vm1571_vm1, %v1572_v15 }
 0x901   :  { %1422 = vmatprep.subr.bf16.mxu1 %v1570_v3 }
 0x904   :  { %1424 = vmatpush3.bf16.msra.mxu1 %v1652_v13 }
 0x905   :  { %1431 = vmatprep.subr.bf16.mxu1 %v1570_v3 }
 0x9d2   :  { %v630_v54 = vpop.f32.mrb[4].mxu1 }
 0x9d3   :  { %v634_v55 = vadd.f32 %v1290_v17, %v630_v54  ;;  %v1340_v56 = vpop.f32.mrb[5].mxu1 }
 0x9d5   :  { %v1217_v57 = vmul.f32 -1.442695, %v634_v55 }
 0x9d7   :  { %1469 = vpow2.f32 %v1217_v57 }
 0x9e1   :  { %v1470_v58 = vpop.eup %1469 }
 0x9e2   :  { %v638_v60 = vadd.f32 1.0, %v1470_v58 }
 0x9e4   :  { %1471 = vrcp.f32 %v638_v60 }
 0x9ee   :  { %v1472_v61 = vpop.eup %1471 }
 0x9ef   :  { %v641_v62 = vmul.f32 2.0, %v1472_v61  ;;  %v643_v8 = vmul.f32 %v1472_v61, %v551_v6 }
 0x9f1   :  { %v1218_v63 = vadd.f32 -1.0, %v641_v62 }
 0x9f3   :  { %645 = vrot.lane.b32.xlu1 %v1218_v63, %s1573_s2 }
 0x9f7   :  { %663 = vperm.xlu1 %1450, %v661_v0  }
 0xa65   :  { %v646_v4 = vpop.permute.xlu1 %645 }
 0xa66   :  { %v648_v5 = vmul.f32 %v1472_v61, %v646_v4 }
 0xa68   :  { %650 = vrot.lane.b32.xlu0 %v648_v5, %s1574_s3 }
 0xa76   :  { %v1803_v14 = vpop.permute.xlu1 %663 }
 0xa77   :  { %vm665_vm3 = vcmp.eq.s32.totalorder %v1803_v14, 1 }
 0xada   :  { %v651_v9 = vpop.permute.xlu0 %650 }
 0xadb   :  { %v653_v10 = vadd.f32 %v651_v9, %v643_v8 }
 0xadd   :  { %1473 = vtanh.f32 %v653_v10 }
 0xae7   :  { %v1474_v12 = vpop.eup %1473 }
 0xae8   :  { %656 = vrot.lane.b32.xlu0 %v1474_v12, %s1573_s2 }
 0xb5a   :  { %v657_v16 = vpop.permute.xlu0 %656 }
 0xb5b   :  { %v1805_v18 = vmul.f32 %v1472_v61, %v657_v16 }
 0xb5d   :  { %v666_v19 = vsel %vm665_vm3, %v1805_v18, %v550_v52 }
 0xb5e   :  { %676 = vrot.lane.b32.xlu1 %v666_v19, %s1574_s3 }
 0xbd0   :  { %v677_v20 = vpop.permute.xlu1 %676 }
 0xbd1   :  { %1350 = vmatmul.mubr.msk.f32.vlgmr.msra.gmra.mrb[10].mxu0 %vm217_vm6, %v677_v20  ;;  %v1009_v20 = vsel %vm1008_vm8, 1, %v1569_v2 }
 0xbd2   :  { %1427 = vmatpush3.bf16.msra.mxu0 %v1635_v7  ;;  %1371 = vmatprep.mubr.msk.f32.mxu0 %vm1571_vm1, %v1572_v15 }
 0xbd3   :  { %1428 = vmatprep.subr.bf16.mxu0 %v1570_v3 }
 0xbd6   :  { %1430 = vmatpush3.bf16.msra.mxu0 %v1652_v13 }
 0xca4   :  { %v746_v21 = vpop.f32.mrb[10].mxu0 }
 0xca5   :  { %v750_v22 = vadd.f32 %v746_v21, %v1764_v29  ;;  %v1351_v23 = vpop.f32.mrb[11].mxu0  ;;  %v667_v29 = vsel %vm665_vm3, %v653_v10, %v551_v6 }
 0xca7   :  { %v1220_v24 = vmul.f32 -1.442695, %v750_v22 }
 0xca9   :  { %1475 = vpow2.f32 %v1220_v24 }
 0xcb3   :  { %v1476_v25 = vpop.eup %1475 }
 0xcb4   :  { %v754_v26 = vadd.f32 1.0, %v1476_v25 }
 0xcb6   :  { %1477 = vrcp.f32 %v754_v26 }
 0xcc0   :  { %v1478_v17 = vpop.eup %1477 }
 0xcc1   :  { %v757_v27 = vmul.f32 2.0, %v1478_v17  ;;  %v759_v36 = vmul.f32 %v1478_v17, %v667_v29 }
 0xcc3   :  { %v1221_v32 = vadd.f32 -1.0, %v757_v27 }
 0xcc5   :  { %761 = vrot.lane.b32.xlu0 %v1221_v32, %s1573_s2 }
 0xcc9   :  { %779 = vperm.xlu0 %1449, %v777_v33  }
 0xd37   :  { %v762_v34 = vpop.permute.xlu0 %761 }
 0xd38   :  { %v764_v35 = vmul.f32 %v1478_v17, %v762_v34 }
 0xd3a   :  { %766 = vrot.lane.b32.xlu1 %v764_v35, %s1574_s3 }
 0xd48   :  { %v1826_v40 = vpop.permute.xlu0 %779 }
 0xd49   :  { %vm781_vm5 = vcmp.eq.s32.totalorder %v1826_v40, 1 }
 0xdac   :  { %v767_v37 = vpop.permute.xlu1 %766 }
 0xdad   :  { %v769_v38 = vadd.f32 %v767_v37, %v759_v36 }
 0xdaf   :  { %1479 = vtanh.f32 %v769_v38 }
 0xdb9   :  { %v1480_v39 = vpop.eup %1479 }
 0xdba   :  { %772 = vrot.lane.b32.xlu1 %v1480_v39, %s1573_s2 }
 0xe2c   :  { %v773_v41 = vpop.permute.xlu1 %772 }
 0xe2d   :  { %v1828_v42 = vmul.f32 %v1478_v17, %v773_v41 }
 0xe2f   :  { %v782_v43 = vsel %vm781_vm5, %v1828_v42, %v666_v19 }
 0xe30   :  { %792 = vrot.lane.b32.xlu0 %v782_v43, %s1574_s3 }
 0xea2   :  { %v793_v44 = vpop.permute.xlu0 %792 }
 0xea3   :  { %1361 = vmatmul.mubr.msk.f32.vlgmr.msra.gmra.mrb[6].mxu1 %vm217_vm6, %v793_v44 }
 0xea4   :  { %1433 = vmatpush3.bf16.msra.mxu1 %v1635_v7  ;;  %1382 = vmatprep.mubr.msk.f32.mxu1 %vm1571_vm1, %v1572_v15  ;;  %v783_v15 = vsel %vm781_vm5, %v769_v38, %v667_v29 }
 0xea5   :  { %1434 = vmatprep.subr.bf16.mxu1 %v1570_v3  ;;  %v893_v3 = vsel %vm892_vm7, 1, %v1569_v2 }
 0xea8   :  { %1436 = vmatpush3.bf16.msra.mxu1 %v1652_v13 }
 0xf76   :  { %v862_v45 = vpop.f32.mrb[6].mxu1 }
 0xf77   :  { %v866_v46 = vadd.f32 %v1762_v28, %v862_v45  ;;  %v1362_v47 = vpop.f32.mrb[7].mxu1  ;;  %v1125_v45 = vsel %vm1124_vm11, 1, %v1569_v2 }
 0xf79   :  { %v1223_v48 = vmul.f32 -1.442695, %v866_v46  ;;  %v784_v46 = vsel %vm781_vm5, %v1828_v42, 0.0 }
 0xf7b   :  { %1481 = vpow2.f32 %v1223_v48 }
 0xf85   :  { %v1482_v50 = vpop.eup %1481 }
 0xf86   :  { %v870_v52 = vadd.f32 1.0, %v1482_v50 }
 0xf88   :  { %1483 = vrcp.f32 %v870_v52 }
 0xf92   :  { %v1484_v53 = vpop.eup %1483 }
 0xf93   :  { %v873_v54 = vmul.f32 2.0, %v1484_v53  ;;  %v875_v28 = vmul.f32 %v1484_v53, %v783_v15 }
 0xf95   :  { %v1224_v55 = vadd.f32 -1.0, %v873_v54 }
 0xf97   :  { %877 = vrot.lane.b32.xlu1 %v1224_v55, %s1573_s2 }
 0xf9b   :  { %895 = vperm.xlu1 %1450, %v893_v3   ;;  %v436_v3 = vsel %vm433_vm9, %v1728_v11, 0.0 }
0x1009   :  { %v878_v7 = vpop.permute.xlu1 %877 }
0x100a   :  { %v880_v13 = vmul.f32 %v1484_v53, %v878_v7  ;;  %v668_v7 = vsel %vm665_vm3, %v1805_v18, 0.0 }
0x100c   :  { %882 = vrot.lane.b32.xlu0 %v880_v13, %s1574_s3 }
0x101a   :  { %v1849_v60 = vpop.permute.xlu1 %895 }
0x101b   :  { %vm897_vm1 = vcmp.eq.s32.totalorder %v1849_v60, 1 }
0x107e   :  { %v883_v56 = vpop.permute.xlu0 %882 }
0x107f   :  { %v885_v57 = vadd.f32 %v883_v56, %v875_v28 }
0x1081   :  { %1485 = vtanh.f32 %v885_v57 }
0x108b   :  { %v1486_v58 = vpop.eup %1485 }
0x108c   :  { %888 = vrot.lane.b32.xlu0 %v1486_v58, %s1573_s2 }
0x10fe   :  { %v889_v61 = vpop.permute.xlu0 %888 }
0x10ff   :  { %v1851_v62 = vmul.f32 %v1484_v53, %v889_v61 }
0x1101   :  { %v898_v63 = vsel %vm897_vm1, %v1851_v62, %v782_v43  ;;  %v900_v13 = vsel %vm897_vm1, %v1851_v62, 0.0 }
0x1102   :  { %908 = vrot.lane.b32.xlu1 %v898_v63, %s1574_s3 }
0x1174   :  { %v909_v0 = vpop.permute.xlu1 %908 }
0x1175   :  { %1372 = vmatmul.mubr.msk.f32.vlgmr.msra.gmra.mrb[12].mxu0 %vm217_vm6, %v909_v0 }
0x1248   :  { %v978_v4 = vpop.f32.mrb[12].mxu0 }
0x1249   :  { %v982_v5 = vadd.f32 %v978_v4, %v1768_v31  ;;  %v1373_v6 = vpop.f32.mrb[13].mxu0  ;;  %v899_v31 = vsel %vm897_vm1, %v885_v57, %v783_v15 }
0x124b   :  { %v1226_v8 = vmul.f32 -1.442695, %v982_v5 }
0x124d   :  { %1487 = vpow2.f32 %v1226_v8 }
0x1257   :  { %v1488_v9 = vpop.eup %1487 }
0x1258   :  { %v986_v10 = vadd.f32 1.0, %v1488_v9 }
0x125a   :  { %1489 = vrcp.f32 %v986_v10 }
0x1264   :  { %v1490_v12 = vpop.eup %1489 }
0x1265   :  { %v989_v16 = vmul.f32 2.0, %v1490_v12  ;;  %v991_v23 = vmul.f32 %v1490_v12, %v899_v31 }
0x1267   :  { %v1227_v19 = vadd.f32 -1.0, %v989_v16 }
0x1269   :  { %993 = vrot.lane.b32.xlu0 %v1227_v19, %s1573_s2 }
0x126d   :  { %1011 = vperm.xlu0 %1449, %v1009_v20  }
0x12db   :  { %v994_v21 = vpop.permute.xlu0 %993 }
0x12dc   :  { %v996_v22 = vmul.f32 %v1490_v12, %v994_v21 }
0x12de   :  { %998 = vrot.lane.b32.xlu1 %v996_v22, %s1574_s3 }
0x12ec   :  { %v1012_v17 = vpop.permute.xlu0 %1011 }
0x12ed   :  { %vm1013_vm10 = vcmp.eq.s32.totalorder %v1012_v17, 1 }
0x1350   :  { %v999_v24 = vpop.permute.xlu1 %998 }
0x1351   :  { %v1001_v25 = vadd.f32 %v999_v24, %v991_v23 }
0x1353   :  { %1491 = vtanh.f32 %v1001_v25  ;;  %v1015_v40 = vsel %vm1013_vm10, %v1001_v25, %v899_v31 }
0x135d   :  { %v1492_v26 = vpop.eup %1491 }
0x135e   :  { %1004 = vrot.lane.b32.xlu1 %v1492_v26, %s1573_s2 }
0x13d0   :  { %v1005_v27 = vpop.permute.xlu1 %1004 }
0x13d1   :  { %v1007_v32 = vmul.f32 %v1490_v12, %v1005_v27 }
0x13d3   :  { %v1014_v33 = vsel %vm1013_vm10, %v1007_v32, %v898_v63  ;;  %v1016_v47 = vsel %vm1013_vm10, %v1007_v32, 0.0 }
0x13d4   :  { %1024 = vrot.lane.b32.xlu0 %v1014_v33, %s1574_s3 }
0x1446   :  { %v1025_v34 = vpop.permute.xlu0 %1024 }
0x1447   :  { %1383 = vmatmul.mubr.msk.f32.vlgmr.msra.gmra.mrb[8].mxu1 %vm217_vm6, %v1025_v34 }
0x151a   :  { %v1094_v35 = vpop.f32.mrb[8].mxu1 }
0x151b   :  { %v1098_v29 = vadd.f32 %v1766_v30, %v1094_v35  ;;  %v1384_v36 = vpop.f32.mrb[9].mxu1  ;;  %v552_v30 = vsel %vm549_vm0, %v1781_v51, 0.0 }
0x151d   :  { %v1229_v37 = vmul.f32 -1.442695, %v1098_v29 }
0x151f   :  { %1493 = vpow2.f32 %v1229_v37 }
0x1529   :  { %v1494_v38 = vpop.eup %1493 }
0x152a   :  { %v1102_v39 = vadd.f32 1.0, %v1494_v38 }
0x152c   :  { %1495 = vrcp.f32 %v1102_v39 }
0x1536   :  { %v1496_v41 = vpop.eup %1495 }
0x1537   :  { %v1105_v43 = vmul.f32 2.0, %v1496_v41  ;;  %v1107_v42 = vmul.f32 %v1496_v41, %v1015_v40 }
0x1539   :  { %v1230_v44 = vadd.f32 -1.0, %v1105_v43 }
0x153b   :  { %1109 = vrot.lane.b32.xlu1 %v1230_v44, %s1573_s2 }
0x153f   :  { %1127 = vperm.xlu1 %1450, %v1125_v45  }
0x1543   :  { %554 = vrot.lane.b32.xlu1 %v552_v30, %s1574_s3 }
0x1547   :  { %786 = vrot.lane.b32.xlu1 %v784_v46, %s1574_s3 }
0x154b   :  { %1018 = vrot.lane.b32.xlu1 %v1016_v47, %s1574_s3 }
0x15ad   :  { %v1110_v1 = vpop.permute.xlu1 %1109 }
0x15ae   :  { %v1112_v48 = vmul.f32 %v1496_v41, %v1110_v1 }
0x15b0   :  { %1114 = vrot.lane.b32.xlu0 %v1112_v48, %s1574_s3 }
0x15be   :  { %v1128_v2 = vpop.permute.xlu1 %1127 }
0x15bf   :  { %vm1129_vm12 = vcmp.eq.s32.totalorder %v1128_v2, 1 }
0x15c2   :  { %v555_v50 = vpop.permute.xlu1 %554 }
0x15c3   :  { %558 = vst.msk [vmem:[#allocation2 + $0x10] sm:$0xff] %vm217_vm6, %v555_v50 }
0x15c6   :  { %v787_v49 = vpop.permute.xlu1 %786 }
0x15c7   :  { %790 = vst.msk [vmem:[#allocation2 + $0x20] sm:$0xff] %vm217_vm6, %v787_v49 }
0x15ca   :  { %v1019_v51 = vpop.permute.xlu1 %1018 }
0x15cb   :  { %1022 = vst.msk [vmem:[#allocation2 + $0x30] sm:$0xff] %vm217_vm6, %v1019_v51 }
0x1622   :  { %v1115_v52 = vpop.permute.xlu0 %1114 }
0x1623   :  { %v1117_v53 = vadd.f32 %v1115_v52, %v1107_v42 }
0x1625   :  { %1497 = vtanh.f32 %v1117_v53  ;;  %v1131_v54 = vsel %vm1129_vm12, %v1117_v53, %v1015_v40 }
0x162f   :  { %v1498_v55 = vpop.eup %1497 }
0x1630   :  { %1120 = vrot.lane.b32.xlu0 %v1498_v55, %s1573_s2 }
0x1634   :  { %438 = vrot.lane.b32.xlu0 %v436_v3, %s1574_s3 }
0x1638   :  { %670 = vrot.lane.b32.xlu0 %v668_v7, %s1574_s3 }
0x163c   :  { %902 = vrot.lane.b32.xlu0 %v900_v13, %s1574_s3 }
0x16a2   :  { %v1121_v15 = vpop.permute.xlu0 %1120 }
0x16a3   :  { %v1123_v28 = vmul.f32 %v1496_v41, %v1121_v15 }
0x16a5   :  { %v1132_v56 = vsel %vm1129_vm12, %v1123_v28, 0.0  ;;  %v1130_v57 = vsel %vm1129_vm12, %v1123_v28, %v1014_v33 }
0x16a6   :  { %v439_v59 = vpop.permute.xlu0 %438  ;;  %1134 = vrot.lane.b32.xlu0 %v1132_v56, %s1574_s3  ;;  %1140 = vrot.lane.b32.xlu1 %v1130_v57, %s1574_s3 }
0x16a7   :  { %442 = vst.msk [vmem:[#allocation2 + $0x8] sm:$0xff] %vm217_vm6, %v439_v59 }
0x16aa   :  { %v671_v11 = vpop.permute.xlu0 %670  ;;  %1145 = vrot.lane.b32.xlu1 %v1131_v54, %s1575_s0 }
0x16ab   :  { %674 = vst.msk [vmem:[#allocation2 + $0x18] sm:$0xff] %vm217_vm6, %v671_v11 }
0x16ae   :  { %v903_v14 = vpop.permute.xlu0 %902 }
0x16af   :  { %906 = vst.msk [vmem:[#allocation2 + $0x28] sm:$0xff] %vm217_vm6, %v903_v14 }
0x1718   :  { %v1135_v18 = vpop.permute.xlu0 %1134  ;;  %v1141_v58 = vpop.permute.xlu1 %1140 }
0x1719   :  { %1138 = vst.msk [vmem:[#allocation2 + $0x38] sm:$0xff] %vm217_vm6, %v1135_v18  ;;  %1143 = vst.msk [vmem:[#allocation4] sm:$0xff] %vm217_vm6, %v1141_v58 }
0x171a   :  { %1510 = shalt.err (!%p1507_p4)
}
0x171b   :  { %s1511_s10 = scalar_lea.hbm %s1965_s5, 128 }
0x171c   :  { %p1512_p5 = scmp.ne.s32.totalorder %s1965_s5, %s1511_s10  ;;  %p1515_p6 = scmp.lt.u32.totalorder %s1511_s10, %s1965_s5 }
0x171e   :  { %p1517_p7 = pnand %p1515_p6, %p1512_p5 }
0x1720   :  { %1520 = shalt.err (!%p1517_p7)
}
0x1721   :  { %1170 = dma.vmem_to_hbm [thread:$0]  %s1168_s27, 128, %s1965_s5, [#allocation5]  }
0x1722   :  { %s1521_s15 = scalar_lea.vmem %s1907_s29, 1024  ;;  %p1526_p9 = scmp.lt.s32.totalorder %s1907_s29, %s1907_s29 }
0x1723   :  { %p1522_p8 = scmp.ne.s32.totalorder %s1907_s29, %s1521_s15  ;;  %p1527_p10 = scmp.lt.s32.totalorder %s1521_s15, %s1521_s15 }
0x1725   :  { %p1528_p11 = por %p1527_p10, %p1526_p9 }
0x1727   :  { %p1529_p12 = pnand %p1528_p11, %p1522_p8 }
0x1729   :  { %1532 = shalt.err (!%p1529_p12)
}
0x172a   :  { %s1533_s18 = scalar_lea.hbm %s1964_s4, 1024 }
0x172b   :  { %p1534_p13 = scmp.ne.s32.totalorder %s1964_s4, %s1533_s18  ;;  %p1537_p0 = scmp.lt.u32.totalorder %s1533_s18, %s1964_s4 }
0x172d   :  { %p1539_p1 = pnand %p1537_p0, %p1534_p13 }
0x172f   :  { %1542 = shalt.err (!%p1539_p1)
}
0x1730   :  { %s1579_s5 = smov 128   ;;  %s1580_s23 = smov 8   ;;  %v1146_v60 = vpop.permute.xlu1 %1145 }
0x1731   :  { %1160 = dma.vmem_to_hbm [thread:$0]  %s1907_s29, 1024, %s1964_s4, [#allocation3], %s1579_s5, %s1579_s5, %s1580_s23   ;;  %1148 = vst.msk [vmem:[#allocation6] sm:$0xff] %vm217_vm6, %v1146_v60 }
0x1732   :  { %s1543_s0 = scalar_lea.vmem %s1911_s1, 128  ;;  %p1548_p3 = scmp.lt.s32.totalorder %s1911_s1, %s1911_s1 }
0x1733   :  { %p1544_p2 = scmp.ne.s32.totalorder %s1911_s1, %s1543_s0  ;;  %p1549_p4 = scmp.lt.s32.totalorder %s1543_s0, %s1543_s0 }
0x1735   :  { %p1550_p5 = por %p1549_p4, %p1548_p3 }
0x1737   :  { %p1551_p6 = pnand %p1550_p5, %p1544_p2 }
0x1739   :  { %1554 = shalt.err (!%p1551_p6)
}
0x173a   :  { %s1555_s28 = scalar_lea.hbm %s1966_s6, 128 }
0x173b   :  { %p1556_p7 = scmp.ne.s32.totalorder %s1966_s6, %s1555_s28  ;;  %p1559_p8 = scmp.lt.u32.totalorder %s1555_s28, %s1966_s6 }
0x173d   :  { %p1561_p9 = pnand %p1559_p8, %p1556_p7 }
0x173f   :  { %1564 = shalt.err (!%p1561_p9)
}
0x1740   :  { %1180 = dma.vmem_to_hbm [thread:$0]  %s1911_s1, 128, %s1966_s6, [#allocation5]  }
0x1741   :  { %1565 = dma.done.wait [#allocation3], 1024  }
0x1742   :  { %1566 = vsyncadd [#allocation3], 4294966272 }
0x1743   :  { %1567 = dma.done.wait [#allocation5], 256  }
0x1744   :  { %1568 = vsyncadd [#allocation5], 4294967040 }
0x1745   :  { %1190 = vsyncpa [#allocation3], 1 }
0x1746   :  { %1191 = vsyncpa [#allocation5], 1 }

</bundles_post_ra>
